<compile_context>
chip_gen: v6e
topology: v6e:2x2x1
jax: 0.10.0
libtpu: 0.0.40
codegen_flags: <defaults>
</compile_context>

<pallas_src>
import functools

import jax
import jax.numpy as jnp
from jax import lax
from jax.experimental import pallas as pl
from jax.experimental.pallas import tpu as pltpu

NEG_SLOPE = 0.1
BN_EPS = 1e-4          # the module uses BatchNorm2d(momentum=0.03, eps=1e-4)


def _leaky(v):
    return jnp.where(v >= 0, v, v * NEG_SLOPE)


# ----------------------------------------------------------------------------
# Capability probes & per-generation tuning
# ----------------------------------------------------------------------------
_BUFFERED_ONE = None
_STRIDED_DS = None
_VMEM_LIMIT = None


def _buffered_one_supported():
    """True if pl.Buffered(1) single-buffering of grid-invariant inputs works."""
    global _BUFFERED_ONE
    if _BUFFERED_ONE is not None:
        return _BUFFERED_ONE

    def _copy_kernel(x_ref, o_ref):
        o_ref[...] = x_ref[...]

    try:
        spec = pl.BlockSpec((8, 128), lambda n: (0, 0),
                            pipeline_mode=pl.Buffered(1))
        out = pl.pallas_call(
            _copy_kernel,
            out_shape=jax.ShapeDtypeStruct((8, 128), jnp.float32),
            grid=(2,),
            in_specs=[spec],
            out_specs=pl.BlockSpec((8, 128), lambda n: (0, 0)),
        )(jnp.full((8, 128), 3.0, jnp.float32))
        out = jax.block_until_ready(out)
        _BUFFERED_ONE = bool(jnp.all(out == 3.0))
    except Exception:
        _BUFFERED_ONE = False
    return _BUFFERED_ONE


def _strided_probe_kernel(x_ref, o_ref, s_ref):
    # Exercises: sublane stride-2 load from an input block, leading-dim
    # stride-2 load from a VMEM scratch.
    s_ref[...] = x_ref[0]
    a = x_ref[0, :, pl.ds(1, 4, 2), :]          # (8, 4, 128)
    b = s_ref[pl.ds(0, 4, 2), :, :]             # (4, 8, 128)
    o_ref[0] = a[0:4, :, :] + b[:, 0:4, :]


def _strided_ds_supported():
    """True if strided pl.ds loads (stride=2 on sublane / leading dims) lower."""
    global _STRIDED_DS
    if _STRIDED_DS is not None:
        return _STRIDED_DS
    try:
        x = jax.random.normal(jax.random.PRNGKey(42), (1, 8, 8, 128), jnp.float32)
        got = pl.pallas_call(
            _strided_probe_kernel,
            out_shape=jax.ShapeDtypeStruct((1, 4, 4, 128), jnp.float32),
            grid=(1,),
            in_specs=[pl.BlockSpec((1, 8, 8, 128), lambda i: (0, 0, 0, 0))],
            out_specs=pl.BlockSpec((1, 4, 4, 128), lambda i: (0, 0, 0, 0)),
            scratch_shapes=[pltpu.VMEM((8, 8, 128), jnp.float32)],
        )(x)
        got = jax.block_until_ready(got)
        want = x[0, 0:4, 1::2, :] + x[0, 0::2, 0:4, :]
        _STRIDED_DS = bool(jnp.allclose(got[0], want, atol=1e-5))
    except Exception:
        _STRIDED_DS = False
    return _STRIDED_DS


def _vmem_limit():
    """Per-generation scoped-VMEM request (review: no fixed 40 MiB constant)."""
    global _VMEM_LIMIT
    if _VMEM_LIMIT is None:
        try:
            cap = int(pltpu.get_tpu_info().vmem_capacity_bytes)
        except Exception:
            cap = 0
        # v5e/v6e: 128 MiB physical -> be generous; v7x (64 MiB) / unknown ->
        # stay conservative (worst case here is ~22 MiB even double-buffered).
        _VMEM_LIMIT = (48 if cap >= 96 * 1024 * 1024 else 30) * 1024 * 1024
    return _VMEM_LIMIT


def _const_spec(block_shape):
    """BlockSpec for a grid-invariant operand (weights / biases).

    Single-buffered when pl.Buffered(1) is supported: the second pipeline
    buffer of a grid-invariant block is pure VMEM waste (the stage-5 3x3
    weight block alone is ~9.4 MiB bf16)."""
    index_map = lambda n: (0,) * len(block_shape)
    if _buffered_one_supported():
        return pl.BlockSpec(block_shape, index_map, pipeline_mode=pl.Buffered(1))
    return pl.BlockSpec(block_shape, index_map)


def _compiler_params(semantics):
    return pltpu.CompilerParams(dimension_semantics=semantics,
                                vmem_limit_bytes=_vmem_limit())


# ----------------------------------------------------------------------------
# Kernel 1: stem CBL as a single matmul over the wrapper-im2col'd K=27 input
# ----------------------------------------------------------------------------
def _matmul_cbl_kernel(x_ref, w_ref, b_ref, o_ref):
    # x_ref: (1, H, W, K) bf16; w_ref: (K, Cout) bf16 (BN folded);
    # b_ref: (1, Cout) f32; o_ref: (1, H, W, Cout) bf16
    _, H, W, K = x_ref.shape
    Cout = o_ref.shape[-1]
    acc = jnp.dot(x_ref[0].reshape(H * W, K), w_ref[...],
                  preferred_element_type=jnp.float32) + b_ref[...]
    o_ref[...] = _leaky(acc).reshape(1, H, W, Cout).astype(o_ref.dtype)


def stem_cbl_pallas(x, w, b):
    """CBL(3, 32, 3, 1, 1). The 3-channel input is im2col'd in the wrapper to a
    K=27 matmul so channels never sit alone on the lane axis."""
    N, H, W, C = x.shape
    xp = jnp.pad(x, ((0, 0), (1, 1), (1, 1), (0, 0)))
    xcol = jnp.concatenate(
        [xp[:, i:i + H, j:j + W, :] for i in range(3) for j in range(3)], axis=-1)
    K = 9 * C
    Cout = w.shape[-1]
    return pl.pallas_call(
        _matmul_cbl_kernel,
        out_shape=jax.ShapeDtypeStruct((N, H, W, Cout), x.dtype),
        grid=(N,),
        in_specs=[
            pl.BlockSpec((1, H, W, K), lambda n: (n, 0, 0, 0)),
            _const_spec((K, Cout)),
            _const_spec((1, Cout)),
        ],
        out_specs=pl.BlockSpec((1, H, W, Cout), lambda n: (n, 0, 0, 0)),
        compiler_params=_compiler_params(("parallel",)),
    )(xcol, w, b.reshape(1, Cout))


# ----------------------------------------------------------------------------
# Kernel 2: stride-2 downsample CBL (3x3, pad 1), fully in-kernel
# ----------------------------------------------------------------------------
def _down_cbl_kernel(x_ref, w_ref, b_ref, o_ref, ccat_ref):
    # x_ref: (1, H, W, Cin) bf16 (unpadded); w_ref: (3, 3*Cin, Cout) bf16 with
    # w_ref[i][(j*Cin + c), :] = conv_w[i, j, c, :]; b_ref: (1, Cout) f32.
    # ccat scratch holds  ccat[hp, w, j*Cin + c] = x_zero_padded[hp, 2w + j, c]
    # so the conv is 3 matmuls with contraction depth 3*Cin (K-deepening) and
    # the matmul operand loads are plain leading-dim strided row picks.
    _, H, W, Cin = x_ref.shape
    _, Ho, Wo, Cout = o_ref.shape

    # Zero only the 1-wide pad borders (every step: megacore-safe, and the
    # interior below is always fully overwritten).
    ccat_ref[0:1] = jnp.zeros((1, Wo, 3 * Cin), ccat_ref.dtype)            # top pad row
    ccat_ref[:, 0:1, 0:Cin] = jnp.zeros((H + 1, 1, Cin), ccat_ref.dtype)   # left pad col (j=0)
    # In-kernel phase extraction via strided loads (no wrapper pad/concat).
    ccat_ref[1:H + 1, :, Cin:2 * Cin] = x_ref[0, :, pl.ds(0, Wo, 2), :]    # j=1
    ccat_ref[1:H + 1, :, 2 * Cin:3 * Cin] = x_ref[0, :, pl.ds(1, Wo, 2), :]  # j=2
    if Wo > 1:
        ccat_ref[1:H + 1, 1:Wo, 0:Cin] = x_ref[0, :, pl.ds(1, Wo - 1, 2), :]  # j=0

    acc = jnp.zeros((Ho * Wo, Cout), jnp.float32)
    for i in range(3):
        patch = ccat_ref[pl.ds(i, Ho, 2), :, :]            # (Ho, Wo, 3*Cin)
        acc = acc + jnp.dot(patch.reshape(Ho * Wo, 3 * Cin), w_ref[i],
                            preferred_element_type=jnp.float32)
    acc = _leaky(acc + b_ref[...])
    o_ref[...] = acc.reshape(1, Ho, Wo, Cout).astype(o_ref.dtype)


def _down_cbl_phases_kernel(x_ref, w_ref, b_ref, o_ref, *, hq):
    # Fallback (no strided-load support): phase-stacked padded input from the
    # wrapper, per-tap K=Cin matmuls (the previous, proven formulation).
    _, Ho, Wo, Cout = o_ref.shape
    Cin = x_ref.shape[-1]
    x = x_ref[0]
    acc = jnp.zeros((Ho * Wo, Cout), jnp.float32)
    for i in range(3):
        for j in range(3):
            p = (i % 2) * 2 + (j % 2)
            r0 = p * hq + i // 2
            c0 = j // 2
            patch = x[r0:r0 + Ho, c0:c0 + Wo, :]
            acc = acc + jnp.dot(patch.reshape(Ho * Wo, Cin), w_ref[i * 3 + j],
                                preferred_element_type=jnp.float32)
    acc = _leaky(acc + b_ref[...])
    o_ref[...] = acc.reshape(1, Ho, Wo, Cout).astype(o_ref.dtype)


def down_cbl_pallas(x, w, b):
    """CBL(Cin, Cout, 3, stride=2, pad=1). x: (N,H,W,Cin) bf16;
    w: (3, 3*Cin, Cout) bf16 (BN folded, K-deepened layout); b: (Cout,) f32."""
    N, H, W, Cin = x.shape
    Cout = w.shape[-1]
    assert H % 2 == 0 and W % 2 == 0, "stride-2 path assumes even spatial dims"
    Ho, Wo = H // 2, W // 2
    out_shape = jax.ShapeDtypeStruct((N, Ho, Wo, Cout), x.dtype)
    out_spec = pl.BlockSpec((1, Ho, Wo, Cout), lambda n: (n, 0, 0, 0))

    if _strided_ds_supported():
        return pl.pallas_call(
            _down_cbl_kernel,
            out_shape=out_shape,
            grid=(N,),
            in_specs=[
                pl.BlockSpec((1, H, W, Cin), lambda n: (n, 0, 0, 0)),
                _const_spec((3, 3 * Cin, Cout)),
                _const_spec((1, Cout)),
            ],
            out_specs=out_spec,
            scratch_shapes=[pltpu.VMEM((H + 1, Wo, 3 * Cin), x.dtype)],
            compiler_params=_compiler_params(("parallel",)),
        )(x, w, b.reshape(1, Cout))

    # Fallback: wrapper-side pad + 4-phase split (costs one extra HBM copy).
    xp = jnp.pad(x, ((0, 0), (1, 1), (1, 1), (0, 0)))
    Hq, Wq = Ho + 1, Wo + 1
    phases = [xp[:, a::2, bb::2, :] for a in range(2) for bb in range(2)]
    xph = jnp.concatenate(phases, axis=1)                     # (N, 4*Hq, Wq, Cin)
    w9 = w.reshape(3, 3, Cin, Cout).reshape(9, Cin, Cout)
    kern = functools.partial(_down_cbl_phases_kernel, hq=Hq)
    return pl.pallas_call(
        kern,
        out_shape=out_shape,
        grid=(N,),
        in_specs=[
            pl.BlockSpec((1, 4 * Hq, Wq, Cin), lambda n: (n, 0, 0, 0)),
            _const_spec((9, Cin, Cout)),
            _const_spec((1, Cout)),
        ],
        out_specs=out_spec,
        compiler_params=_compiler_params(("parallel",)),
    )(xph, w9, b.reshape(1, Cout))


# ----------------------------------------------------------------------------
# Kernel 3: fused ResidualBlock = x + CBL3x3(CBL1x1(x))
# ----------------------------------------------------------------------------
def _resblock_kernel(x_ref, w1_ref, b1_ref, w2_ref, b2_ref, o_ref, cat_ref):
    # x_ref: (1, H, W, C) bf16
    # w1_ref: (C, Cmid) bf16, b1_ref: (1, Cmid) f32        (1x1 CBL, BN folded)
    # w2_ref: (3, 3*Cmid, C) bf16 with w2_ref[di][(dj*Cmid+c), :] = conv_w[di,dj,c,:]
    # b2_ref: (1, C) f32
    # cat_ref: VMEM scratch (H+2, W, 3*Cmid) bf16 holding
    #          cat[hp, w, dj*Cmid + c] = mid_zero_padded[hp, w + dj, c]
    _, H, W, C = x_ref.shape
    Cmid = w1_ref.shape[-1]
    xm = x_ref[0].reshape(H * W, C)

    # --- 1x1 CBL (intermediate never leaves VMEM) ---
    h = _leaky(jnp.dot(xm, w1_ref[...], preferred_element_type=jnp.float32)
               + b1_ref[...])
    hm = h.reshape(H, W, Cmid).astype(cat_ref.dtype)

    # --- build the dj-shifted channel concat; the column shift is absorbed in
    # registers so the stores/loads of the scratch are plain row slices.  Only
    # the 1-row pad borders are zeroed (every step -> megacore-safe; the
    # interior is always fully overwritten, no full-scratch re-zeroing). ---
    zc = jnp.zeros((H, 1, Cmid), hm.dtype)
    if W > 1:
        left = jnp.concatenate([zc, hm[:, :W - 1, :]], axis=1)    # dj = 0
        right = jnp.concatenate([hm[:, 1:, :], zc], axis=1)       # dj = 2
    else:
        left, right = zc, zc
    cat_ref[1:H + 1] = jnp.concatenate([left, hm, right], axis=-1)
    zrow = jnp.zeros((1, W, 3 * Cmid), cat_ref.dtype)
    cat_ref[0:1] = zrow
    cat_ref[H + 1:H + 2] = zrow

    # --- 3x3 CBL (pad=1, stride=1): 3 matmuls with K = 3*Cmid ---
    acc = jnp.zeros((H * W, C), jnp.float32)
    for di in range(3):
        acc = acc + jnp.dot(cat_ref[di:di + H].reshape(H * W, 3 * Cmid),
                            w2_ref[di], preferred_element_type=jnp.float32)
    # --- fused residual add ---
    acc = _leaky(acc + b2_ref[...]) + xm.astype(jnp.float32)
    o_ref[...] = acc.reshape(1, H, W, C).astype(o_ref.dtype)


def resblock_pallas(x, blk):
    N, H, W, C = x.shape
    Cmid = blk["w1"].shape[-1]
    return pl.pallas_call(
        _resblock_kernel,
        out_shape=jax.ShapeDtypeStruct((N, H, W, C), x.dtype),
        grid=(N,),
        in_specs=[
            pl.BlockSpec((1, H, W, C), lambda n: (n, 0, 0, 0)),
            _const_spec((C, Cmid)),
            _const_spec((1, Cmid)),
            _const_spec((3, 3 * Cmid, C)),
            _const_spec((1, C)),
        ],
        out_specs=pl.BlockSpec((1, H, W, C), lambda n: (n, 0, 0, 0)),
        scratch_shapes=[pltpu.VMEM((H + 2, W, 3 * Cmid), x.dtype)],
        compiler_params=_compiler_params(("parallel",)),
    )(x, blk["w1"], blk["b1"].reshape(1, Cmid), blk["w2"], blk["b2"].reshape(1, C))


# ----------------------------------------------------------------------------
# Kernel 4: head = global average pool + Linear + Softmax (lane-dense classes)
# ----------------------------------------------------------------------------
def _head_kernel(f_ref, w_ref, b_ref, o_ref, *, inv_hw):
    # f_ref: (N, Hf, Wf, C) bf16; w_ref: (C, NCP) f32; b_ref: (1, NCP) f32
    # (classes padded up to a multiple of 128; padded bias = -1e30 so the
    # padded softmax probabilities are exactly 0)
    f = f_ref[...].astype(jnp.float32)
    pooled = jnp.sum(f, axis=(1, 2)) * inv_hw              # (N, C)
    logits = jnp.dot(pooled, w_ref[...],
                     preferred_element_type=jnp.float32) + b_ref[...]
    m = jnp.max(logits, axis=-1, keepdims=True)
    e = jnp.exp(logits - m)
    o_ref[...] = (e / jnp.sum(e, axis=-1, keepdims=True)).astype(o_ref.dtype)


def head_pallas(feat, w, b):
    N, Hf, Wf, C = feat.shape
    NCP = w.shape[-1]
    kern = functools.partial(_head_kernel, inv_hw=1.0 / float(Hf * Wf))
    return pl.pallas_call(
        kern,
        out_shape=jax.ShapeDtypeStruct((N, NCP), jnp.float32),
        grid=(1,),
        in_specs=[
            pl.BlockSpec((N, Hf, Wf, C), lambda i: (0, 0, 0, 0)),
            _const_spec((C, NCP)),
            _const_spec((1, NCP)),
        ],
        out_specs=pl.BlockSpec((N, NCP), lambda i: (0, 0)),
        compiler_params=_compiler_params(("arbitrary",)),
    )(feat, w, b.reshape(1, NCP))


# ----------------------------------------------------------------------------
# Parameter construction (synthetic, deterministic) with BN folded at init
# ----------------------------------------------------------------------------
def _fold_bn(w, gamma, beta, mean, var, eps=BN_EPS):
    scale = gamma / jnp.sqrt(var + eps)
    return w * scale, beta - mean * scale


def make_cbl_params(key, cin, cout, k):
    kw, kg, kb, km, kv = jax.random.split(key, 5)
    fan_in = cin * k * k
    w = jax.random.normal(kw, (k * k, cin, cout), jnp.float32) * (1.0 / fan_in) ** 0.5
    gamma = 1.0 + 0.1 * jax.random.normal(kg, (cout,), jnp.float32)
    beta = 0.1 * jax.random.normal(kb, (cout,), jnp.float32)
    mean = 0.1 * jax.random.normal(km, (cout,), jnp.float32)
    var = 1.0 + 0.1 * jax.random.uniform(kv, (cout,), jnp.float32)
    wf, bf = _fold_bn(w, gamma, beta, mean, var)
    return wf.astype(jnp.bfloat16), bf.astype(jnp.float32)


def init_darknet53_params(key, num_classes=1000):
    keys = iter(jax.random.split(key, 128))
    sw, sb = make_cbl_params(next(keys), 3, 32, 3)
    # stem stored as (27, 32): flat index (i*3 + j)*3 + c matches the im2col order
    params = {"stem": {"w": sw.reshape(27, 32), "b": sb}, "stages": []}
    cin = 32
    for cout, nblocks in [(64, 1), (128, 2), (256, 8), (512, 8), (1024, 4)]:
        dw, db = make_cbl_params(next(keys), cin, cout, 3)       # (9, cin, cout)
        stage = {"down": {"w": dw.reshape(3, 3 * cin, cout), "b": db}, "blocks": []}
        cmid = cout // 2
        for _ in range(nblocks):
            w1, b1 = make_cbl_params(next(keys), cout, cmid, 1)
            w2, b2 = make_cbl_params(next(keys), cmid, cout, 3)
            stage["blocks"].append({
                "w1": w1.reshape(cout, cmid), "b1": b1,          # 1x1 conv as matmul
                "w2": w2.reshape(3, 3 * cmid, cout), "b2": b2,   # K-deepened layout
            })
        params["stages"].append(stage)
        cin = cout
    kfw, kfb = jax.random.split(next(keys), 2)
    ncp = ((num_classes + 127) // 128) * 128                      # lane-dense classes
    fc_w = jax.random.normal(kfw, (1024, num_classes), jnp.float32) * (1.0 / 1024) ** 0.5
    fc_b = 0.01 * jax.random.normal(kfb, (num_classes,), jnp.float32)
    params["fc_w"] = jnp.pad(fc_w, ((0, 0), (0, ncp - num_classes)))
    params["fc_b"] = jnp.pad(fc_b, (0, ncp - num_classes), constant_values=-1e30)
    return params


# ----------------------------------------------------------------------------
# Forward pass (NCHW in, (N, num_classes) softmax out, like the PyTorch module)
# ----------------------------------------------------------------------------
@functools.partial(jax.jit, static_argnames=("num_classes",))
def darknet53_forward(x_nchw, params, *, num_classes):
    x = jnp.transpose(x_nchw, (0, 2, 3, 1)).astype(jnp.bfloat16)   # NCHW -> NHWC
    x = stem_cbl_pallas(x, params["stem"]["w"], params["stem"]["b"])
    for stage in params["stages"]:
        x = down_cbl_pallas(x, stage["down"]["w"], stage["down"]["b"])
        for blk in stage["blocks"]:
            x = resblock_pallas(x, blk)
    probs = head_pallas(x, params["fc_w"], params["fc_b"])
    return probs[:, :num_classes]


# ----------------------------------------------------------------------------
# Pure-JAX layer references (precision-matched) for single-layer verification
# ----------------------------------------------------------------------------
def _ref_cbl(x, w_hwio, b, stride, pad):
    y = lax.conv_general_dilated(
        x.astype(jnp.float32), w_hwio.astype(jnp.float32),
        window_strides=(stride, stride), padding=((pad, pad), (pad, pad)),
        dimension_numbers=("NHWC", "HWIO", "NHWC"))
    return _leaky(y + b.reshape(1, 1, 1, -1))


def _ref_resblock(x, blk):
    C = x.shape[-1]
    Cmid = blk["w1"].shape[-1]
    h = _ref_cbl(x, blk["w1"].reshape(1, 1, C, Cmid), blk["b1"], 1, 0)
    h = h.astype(jnp.bfloat16)          # mirror the kernel's bf16 intermediate
    y = _ref_cbl(h, blk["w2"].reshape(3, 3, Cmid, C), blk["b2"], 1, 1)
    return (y + x.astype(jnp.float32)).astype(jnp.bfloat16)


def _ref_head(feat, w, b):
    pooled = jnp.mean(feat.astype(jnp.float32), axis=(1, 2))
    return jax.nn.softmax(pooled @ w + b, axis=-1)


if __name__ == "__main__":
    key = jax.random.PRNGKey(0)
    k_x, k_p, k_c = jax.random.split(key, 3)

    num_classes = 1000
    params = init_darknet53_params(k_p, num_classes)

    # Warm the capability probes eagerly (outside any jit trace).
    _buffered_one_supported()
    _strided_ds_supported()
    _vmem_limit()

    def _assert_close(got, ref, name, rel=0.05):
        got = jnp.asarray(got, jnp.float32)
        ref = jnp.asarray(ref, jnp.float32)
        err = float(jnp.max(jnp.abs(got - ref)))
        tol = rel * (1.0 + float(jnp.max(jnp.abs(ref))))
        assert err <= tol, f"{name}: max|diff|={err:.4g} > tol={tol:.4g}"

    # ---- single-layer correctness checks vs. pure-JAX conv references ------
    kc = jax.random.split(k_c, 8)
    xs = jax.random.normal(kc[0], (2, 16, 16, 3), jnp.float32).astype(jnp.bfloat16)
    _assert_close(stem_cbl_pallas(xs, params["stem"]["w"], params["stem"]["b"]),
                  _ref_cbl(xs, params["stem"]["w"].reshape(3, 3, 3, 32),
                           params["stem"]["b"], 1, 1).astype(jnp.bfloat16),
                  "stem CBL")

    s1 = params["stages"][0]
    xd = jax.random.normal(kc[1], (2, 16, 16, 32), jnp.float32).astype(jnp.bfloat16)
    _assert_close(down_cbl_pallas(xd, s1["down"]["w"], s1["down"]["b"]),
                  _ref_cbl(xd, s1["down"]["w"].reshape(3, 3, 32, 64),
                           s1["down"]["b"], 2, 1).astype(jnp.bfloat16),
                  "stride-2 CBL")

    xr = jax.random.normal(kc[2], (2, 16, 16, 64), jnp.float32).astype(jnp.bfloat16)
    _assert_close(resblock_pallas(xr, s1["blocks"][0]),
                  _ref_resblock(xr, s1["blocks"][0]), "residual block (64ch)")

    s5 = params["stages"][4]
    xr5 = jax.random.normal(kc[3], (2, 2, 2, 1024), jnp.float32).astype(jnp.bfloat16)
    _assert_close(resblock_pallas(xr5, s5["blocks"][0]),
                  _ref_resblock(xr5, s5["blocks"][0]), "residual block (1024ch)")

    xf = jax.random.normal(kc[4], (2, 4, 4, 1024), jnp.float32).astype(jnp.bfloat16)
    _assert_close(head_pallas(xf, params["fc_w"], params["fc_b"]),
                  _ref_head(xf, params["fc_w"], params["fc_b"]),
                  "head", rel=1e-3)

    # ---- full forward pass --------------------------------------------------
    N, C, H, W = 4, 3, 64, 64            # Darknet53 expects 3 input channels
    x = jax.random.normal(k_x, (N, C, H, W), jnp.float32)   # NCHW like PyTorch

    out = darknet53_forward(x, params, num_classes=num_classes)
    out = jax.block_until_ready(out)

    assert out.shape == (N, num_classes), out.shape
    assert bool(jnp.all(jnp.isfinite(out))), "non-finite output"
    assert bool(jnp.allclose(jnp.sum(out, axis=-1), 1.0, atol=1e-3)), \
        "softmax rows must sum to 1"
    print("KERNEL_OK")
</pallas_src>

<mosaic_0001>
module attributes {stable_mosaic.version = 11 : i64} {
  func.func @_copy_kernel(%arg0: i32, %arg1: memref<8x128xf32, #tpu.memory_space<vmem>>, %arg2: memref<8x128xf32, #tpu.memory_space<vmem>>) attributes {dimension_semantics = [#tpu.dimension_semantics<arbitrary>], iteration_bounds = array<i64: 2>, scalar_prefetch = 0 : i64, scratch_operands = 0 : i64, tpu.core_type = #tpu.core_type<tc>, window_params = [{pipeline_mode = #tpu.pipeline_mode<synchronous>, transform_indices = @transform_0, window_bounds = array<i64: 8, 128>}, {pipeline_mode = #tpu.pipeline_mode<synchronous>, transform_indices = @transform_1, window_bounds = array<i64: 8, 128>}]} {
    %c0 = arith.constant 0 : index
    %c0_0 = arith.constant 0 : index
    %0 = vector.load %arg1[%c0, %c0_0] : memref<8x128xf32, #tpu.memory_space<vmem>>, vector<8x128xf32>
    %c0_1 = arith.constant 0 : index
    %c0_2 = arith.constant 0 : index
    %1 = vector.load %arg2[%c0_1, %c0_2] : memref<8x128xf32, #tpu.memory_space<vmem>>, vector<8x128xf32>
    tpu.vector_store %arg2[%c0_1, %c0_2], %0 {strides = array<i32>} : memref<8x128xf32, #tpu.memory_space<vmem>>, vector<8x128xf32>,
    return
  }
  func.func @transform_0(%arg0: i32) -> (i32, i32) {
    %c0_i32 = arith.constant 0 : i32
    %c0_i32_0 = arith.constant 0 : i32
    %c0_i32_1 = arith.constant 0 : i32
    return %c0_i32, %c0_i32_0 : i32, i32
  }
  func.func @transform_1(%arg0: i32) -> (i32, i32) {
    %c0_i32 = arith.constant 0 : i32
    %c0_i32_0 = arith.constant 0 : i32
    %c0_i32_1 = arith.constant 0 : i32
    return %c0_i32, %c0_i32_0 : i32, i32
  }
}

module attributes {stable_mosaic.version = 11 : i64} {
  func.func @_strided_probe_kernel(%arg0: i32, %arg1: memref<1x8x8x128xf32, #tpu.memory_space<vmem>>, %arg2: memref<1x4x4x128xf32, #tpu.memory_space<vmem>>, %arg3: memref<8x8x128xf32, #tpu.memory_space<vmem>>) attributes {dimension_semantics = [#tpu.dimension_semantics<arbitrary>], iteration_bounds = array<i64: 1>, scalar_prefetch = 0 : i64, scratch_operands = 1 : i64, tpu.core_type = #tpu.core_type<tc>, window_params = [{pipeline_mode = #tpu.pipeline_mode<synchronous>, transform_indices = @transform_0, window_bounds = array<i64: 1, 8, 8, 128>}, {pipeline_mode = #tpu.pipeline_mode<synchronous>, transform_indices = @transform_1, window_bounds = array<i64: 1, 4, 4, 128>}]} {
    %c0 = arith.constant 0 : index
    %c0_0 = arith.constant 0 : index
    %c0_1 = arith.constant 0 : index
    %c0_2 = arith.constant 0 : index
    %0 = vector.load %arg1[%c0, %c0_0, %c0_1, %c0_2] : memref<1x8x8x128xf32, #tpu.memory_space<vmem>>, vector<1x8x8x128xf32>
    %1 = vector.shape_cast %0 : vector<1x8x8x128xf32> to vector<8x8x128xf32>
    %c0_3 = arith.constant 0 : index
    %c0_4 = arith.constant 0 : index
    %c0_5 = arith.constant 0 : index
    %2 = vector.load %arg3[%c0_3, %c0_4, %c0_5] : memref<8x8x128xf32, #tpu.memory_space<vmem>>, vector<8x8x128xf32>
    tpu.vector_store %arg3[%c0_3, %c0_4, %c0_5], %1 {strides = array<i32>} : memref<8x8x128xf32, #tpu.memory_space<vmem>>, vector<8x8x128xf32>,
    %c0_6 = arith.constant 0 : index
    %c0_7 = arith.constant 0 : index
    %c1 = arith.constant 1 : index
    %c0_8 = arith.constant 0 : index
    %3 = tpu.strided_load %arg1[%c0_6, %c0_7, %c1, %c0_8] {strides = array<i32: 1, 1, 2, 1>} : memref<1x8x8x128xf32, #tpu.memory_space<vmem>>, vector<1x8x4x128xf32>
    %4 = vector.shape_cast %3 : vector<1x8x4x128xf32> to vector<8x4x128xf32>
    %c0_9 = arith.constant 0 : index
    %c0_10 = arith.constant 0 : index
    %c0_11 = arith.constant 0 : index
    %5 = tpu.strided_load %arg3[%c0_9, %c0_10, %c0_11] {strides = array<i32: 2, 1, 1>} : memref<8x8x128xf32, #tpu.memory_space<vmem>>, vector<4x8x128xf32>
    %6 = vector.extract_strided_slice %4 {offsets = [0, 0, 0], sizes = [4, 4, 128], strides = [1, 1, 1]} : vector<8x4x128xf32> to vector<4x4x128xf32>
    %7 = vector.extract_strided_slice %5 {offsets = [0, 0, 0], sizes = [4, 4, 128], strides = [1, 1, 1]} : vector<4x8x128xf32> to vector<4x4x128xf32>
    %8 = arith.addf %6, %7 : vector<4x4x128xf32>
    %c0_12 = arith.constant 0 : index
    %c0_13 = arith.constant 0 : index
    %c0_14 = arith.constant 0 : index
    %c0_15 = arith.constant 0 : index
    %9 = vector.load %arg2[%c0_12, %c0_13, %c0_14, %c0_15] : memref<1x4x4x128xf32, #tpu.memory_space<vmem>>, vector<1x4x4x128xf32>
    %10 = vector.shape_cast %9 : vector<1x4x4x128xf32> to vector<4x4x128xf32>
    %11 = vector.shape_cast %8 : vector<4x4x128xf32> to vector<1x4x4x128xf32>
    tpu.vector_store %arg2[%c0_12, %c0_13, %c0_14, %c0_15], %11 {strides = array<i32>} : memref<1x4x4x128xf32, #tpu.memory_space<vmem>>, vector<1x4x4x128xf32>,
    return
  }
  func.func @transform_0(%arg0: i32) -> (i32, i32, i32, i32) {
    %c0_i32 = arith.constant 0 : i32
    %c0_i32_0 = arith.constant 0 : i32
    %c0_i32_1 = arith.constant 0 : i32
    %c0_i32_2 = arith.constant 0 : i32
    %c0_i32_3 = arith.constant 0 : i32
    return %c0_i32, %c0_i32_0, %c0_i32_1, %c0_i32_2 : i32, i32, i32, i32
  }
  func.func @transform_1(%arg0: i32) -> (i32, i32, i32, i32) {
    %c0_i32 = arith.constant 0 : i32
    %c0_i32_0 = arith.constant 0 : i32
    %c0_i32_1 = arith.constant 0 : i32
    %c0_i32_2 = arith.constant 0 : i32
    %c0_i32_3 = arith.constant 0 : i32
    return %c0_i32, %c0_i32_0, %c0_i32_1, %c0_i32_2 : i32, i32, i32, i32
  }
}

module attributes {stable_mosaic.version = 11 : i64} {
  func.func @_matmul_cbl_kernel(%arg0: i32, %arg1: memref<1x16x16x27xbf16, #tpu.memory_space<vmem>>, %arg2: memref<27x32xbf16, #tpu.memory_space<vmem>>, %arg3: memref<1x32xf32, #tpu.memory_space<vmem>>, %arg4: memref<1x16x16x32xbf16, #tpu.memory_space<vmem>>) attributes {dimension_semantics = [#tpu.dimension_semantics<parallel>], iteration_bounds = array<i64: 2>, scalar_prefetch = 0 : i64, scratch_operands = 0 : i64, tpu.core_type = #tpu.core_type<tc>, window_params = [{transform_indices = @transform_0, window_bounds = array<i64: 1, 16, 16, 27>}, {pipeline_mode = #tpu.pipeline_mode<synchronous>, transform_indices = @transform_1, window_bounds = array<i64: 27, 32>}, {pipeline_mode = #tpu.pipeline_mode<synchronous>, transform_indices = @transform_2, window_bounds = array<i64: 1, 32>}, {transform_indices = @transform_3, window_bounds = array<i64: 1, 16, 16, 32>}]} {
    %c0 = arith.constant 0 : index
    %c0_0 = arith.constant 0 : index
    %c0_1 = arith.constant 0 : index
    %c0_2 = arith.constant 0 : index
    %0 = vector.load %arg1[%c0, %c0_0, %c0_1, %c0_2] : memref<1x16x16x27xbf16, #tpu.memory_space<vmem>>, vector<1x16x16x27xbf16>
    %1 = vector.shape_cast %0 : vector<1x16x16x27xbf16> to vector<16x16x27xbf16>
    %2 = vector.shape_cast %1 : vector<16x16x27xbf16> to vector<256x27xbf16>
    %c0_3 = arith.constant 0 : index
    %c0_4 = arith.constant 0 : index
    %3 = vector.load %arg2[%c0_3, %c0_4] : memref<27x32xbf16, #tpu.memory_space<vmem>>, vector<27x32xbf16>
    %cst = arith.constant dense<0.000000e+00> : vector<256x32xf32>
    %4 = tpu.matmul %2, %3, %cst {dimension_numbers = #tpu.dot_dimension_numbers<[1], [0], [0], [1], [0, 0, 1, 1], [], []>} : vector<256x27xbf16>, vector<27x32xbf16>, vector<256x32xf32> -> vector<256x32xf32>
    %c0_5 = arith.constant 0 : index
    %c0_6 = arith.constant 0 : index
    %5 = vector.load %arg3[%c0_5, %c0_6] : memref<1x32xf32, #tpu.memory_space<vmem>>, vector<1x32xf32>
    %6 = vector.broadcast %5 : vector<1x32xf32> to vector<256x32xf32>
    %7 = arith.addf %4, %6 : vector<256x32xf32>
    %cst_7 = arith.constant 0.000000e+00 : f32
    %8 = vector.broadcast %cst_7 : f32 to vector<256x32xf32>
    %9 = arith.cmpf oge, %7, %8 : vector<256x32xf32>
    %cst_8 = arith.constant 1.000000e-01 : f32
    %10 = vector.broadcast %cst_8 : f32 to vector<256x32xf32>
    %11 = arith.mulf %7, %10 : vector<256x32xf32>
    %12 = arith.select %9, %7, %11 : vector<256x32xi1>, vector<256x32xf32>
    %13 = vector.shape_cast %12 : vector<256x32xf32> to vector<1x16x16x32xf32>
    %14 = arith.truncf %13 : vector<1x16x16x32xf32> to vector<1x16x16x32xbf16>
    %c0_9 = arith.constant 0 : index
    %c0_10 = arith.constant 0 : index
    %c0_11 = arith.constant 0 : index
    %c0_12 = arith.constant 0 : index
    %15 = vector.load %arg4[%c0_9, %c0_10, %c0_11, %c0_12] : memref<1x16x16x32xbf16, #tpu.memory_space<vmem>>, vector<1x16x16x32xbf16>
    tpu.vector_store %arg4[%c0_9, %c0_10, %c0_11, %c0_12], %14 {strides = array<i32>} : memref<1x16x16x32xbf16, #tpu.memory_space<vmem>>, vector<1x16x16x32xbf16>,
    return
  }
  func.func @transform_0(%arg0: i32) -> (i32, i32, i32, i32) {
    %c0_i32 = arith.constant 0 : i32
    %c0_i32_0 = arith.constant 0 : i32
    %c0_i32_1 = arith.constant 0 : i32
    %c0_i32_2 = arith.constant 0 : i32
    return %arg0, %c0_i32, %c0_i32_0, %c0_i32_1 : i32, i32, i32, i32
  }
  func.func @transform_1(%arg0: i32) -> (i32, i32) {
    %c0_i32 = arith.constant 0 : i32
    %c0_i32_0 = arith.constant 0 : i32
    %c0_i32_1 = arith.constant 0 : i32
    return %c0_i32, %c0_i32_0 : i32, i32
  }
  func.func @transform_2(%arg0: i32) -> (i32, i32) {
    %c0_i32 = arith.constant 0 : i32
    %c0_i32_0 = arith.constant 0 : i32
    %c0_i32_1 = arith.constant 0 : i32
    return %c0_i32, %c0_i32_0 : i32, i32
  }
  func.func @transform_3(%arg0: i32) -> (i32, i32, i32, i32) {
    %c0_i32 = arith.constant 0 : i32
    %c0_i32_0 = arith.constant 0 : i32
    %c0_i32_1 = arith.constant 0 : i32
    %c0_i32_2 = arith.constant 0 : i32
    return %arg0, %c0_i32, %c0_i32_0, %c0_i32_1 : i32, i32, i32, i32
  }
}

</mosaic_0001>

<bundles_post_ra>
// kernel: tpu_custom_call.1
= control target key start
LH: loop header
LB: loop body
LE: loop exit
PB: predicated region body
PF: predicated region fallthrough
CT: control target
= control target key end

     0   :  { %6 = vsyncpa [#allocation3], 0  ;;  %s304_s0 = inlined_call_operand.hbm [shape: f32[8,128], index: 0, kind: input, shape index: {}]   ;;  %s305_s1 = inlined_call_operand.hbm [shape: f32[8,128], index: 1, kind: output, shape index: {}]  }
   0x1   :  { %7 = vsyncpa [#allocation4], 0  ;;  %s257_s6 = smov 0  }
   0x2 LB: > { %s144_s7 = sadd.s32 4294967295, %s243_s6   ;;  %p145_p0 = scmp.ge.s32.totalorder %s243_s6, 1  ;;  %s243_s6 = sphi %s257_s6, %s13_s6  }
   0x3   : > { %p60_p1 = scmp.lt.s32.totalorder %s243_s6, 3  ;;  %p269_p3 = scmp.eq.s32.totalorder %s144_s7, 0 }
   0x4   : > { %s245_s10 = smov [#allocation2]  }
   0x5   : > { %p265_p2 = pnand %p145_p0, %p60_p1  ;;  %s73_s11 = sshll.u32 %s245_s10, 4  ;;  %s74_s11 = int_to_ptr.vmem [resolvable:$true] %s73_s11 }
   0x6   : > { %s190_s12 = scalar_lea.vmem %s74_s11, 128  ;;  %p198_p10 = scmp.lt.s32.totalorder %s74_s11, %s74_s11 }
   0x7   : > { %p161_p4 = pneg %p265_p2  ;;  %p191_p7 = scmp.ne.s32.totalorder %s74_s11, %s190_s12 }
   0x8   : > { %p199_p11 = scmp.lt.s32.totalorder %s190_s12, %s190_s12 }
   0x9   : > { %p162_p5 = pnand %p269_p3, %p161_p4 }
   0xa   : > { %p200_p12 = por %p199_p11, %p198_p10 }
   0xb   : > { %p181_p6 = pneg %p162_p5 }
   0xd   : > { %p193_p8 = pnand %p191_p7, %p181_p6 }
   0xf   : > { %p194_p9 = pneg %p193_p8 }
  0x11   : > { %p201_p13 = pnand %p200_p12, %p194_p9 }
  0x13   : > { %204 = shalt.err (!%p201_p13)
}
  0x14   : > { %164 = dma.hbm_to_vmem [thread:$0]  (!%p162_p5), %s304_s0, 128, %s74_s11, [#allocation3]  }
  0x15   : > { %86 = sbr.rel (%p265_p2) target bundleno = 42 (0x2a), region = 24 }
  0x1a   : > { %234 = dma.done.wait (%p269_p3), [#allocation3], 128  }
  0x1b   : > { %236 = vsyncadd (%p269_p3), [#allocation3], 4294967168  ;;  %s246_s15 = smov [#allocation5]   ;;  %p286_p0 = scmp.eq.s32.totalorder %s144_s7, 1  ;;  %v96_v0 = vld [vmem:[#allocation2] sm:$0xff] }
  0x1c   : > { %s105_s16 = sshll.u32 %s246_s15, 4  ;;  %97 = vst [vmem:[#allocation5] sm:$0xff] %v96_v0  ;;  %s106_s16 = int_to_ptr.vmem [resolvable:$true] %s105_s16 }
  0x1d   : > { %s205_s18 = scalar_lea.vmem %s106_s16, 128  ;;  %p212_p5 = scmp.lt.s32.totalorder %s106_s16, %s106_s16 }
  0x1e   : > { %p206_p1 = scmp.ne.s32.totalorder %s106_s16, %s205_s18  ;;  %p213_p6 = scmp.lt.s32.totalorder %s205_s18, %s205_s18 }
  0x20   : > { %p207_p2 = pnand %p206_p1, %p286_p0  ;;  %p214_p7 = por %p213_p6, %p212_p5 }
  0x22   : > { %p208_p4 = pneg %p207_p2 }
  0x24   : > { %p215_p8 = pnand %p214_p7, %p208_p4 }
  0x26   : > { %218 = shalt.err (!%p215_p8)
}
  0x27   : > { %158 = dma.vmem_to_hbm [thread:$0]  (%p286_p0), %s106_s16, 128, %s305_s1, [#allocation4]  }
  0x28   : > { %238 = dma.done.wait (%p286_p0), [#allocation4], 128  }
  0x29   : > { %240 = vsyncadd (%p286_p0), [#allocation4], 4294967168 }
  0x2a PF: > { %s13_s6 = sadd.s32 1, %s243_s6  }
  0x2b   : > { %p10_p3 = scmp.ge.s32.totalorder %s13_s6, 4  }
  0x2d   :  { %12 = sbr.rel (!%p10_p3) target bundleno = 2 (0x2), region = 53 }
  0x32   :  { %118 = vsyncpa [#allocation3], 1 }
  0x33   :  { %120 = vsyncpa [#allocation3 + $0x1], 1 }
  0x34   :  { %121 = vsyncpa [#allocation4], 1 }
  0x35   :  { %123 = vsyncpa [#allocation4 + $0x1], 1 }

// kernel: tpu_custom_call.1
= control target key start
LH: loop header
LB: loop body
LE: loop exit
PB: predicated region body
PF: predicated region fallthrough
CT: control target
= control target key end

     0   :  { %6 = vsyncpa [#allocation4], 0  ;;  %s148_s0 = inlined_call_operand.hbm [shape: f32[1,8,8,128], index: 0, kind: input, shape index: {}]   ;;  %s149_s1 = inlined_call_operand.hbm [shape: f32[1,4,4,128], index: 1, kind: output, shape index: {}]  }
   0x1   :  { %7 = vsyncpa [#allocation5], 0  ;;  %s126_s6 = smov [#allocation3]  }
   0x2   :  { %s13_s7 = sshll.u32 %s126_s6, 4  ;;  %s14_s7 = int_to_ptr.vmem [resolvable:$true] %s13_s7 }
   0x3   :  { %s90_s8 = scalar_lea.vmem %s14_s7, 1024  ;;  %p95_p1 = scmp.lt.s32.totalorder %s14_s7, %s14_s7 }
   0x4   :  { %p91_p0 = scmp.ne.s32.totalorder %s14_s7, %s90_s8  ;;  %p96_p2 = scmp.lt.s32.totalorder %s90_s8, %s90_s8 }
   0x6   :  { %p97_p3 = por %p96_p2, %p95_p1 }
   0x8   :  { %p98_p4 = pnand %p97_p3, %p91_p0 }
   0xa   :  { %101 = shalt.err (!%p98_p4)
}
   0xb   :  { %s127_s9 = smov 128   ;;  %s128_s10 = smov 8  }
   0xc   :  { %19 = dma.hbm_to_vmem [thread:$0]  %s148_s0, 1024, %s14_s7, [#allocation4], %s127_s9, %s127_s9, %s128_s10  }
   0xd   :  { %122 = dma.done.wait [#allocation4], 1024  }
   0xe   :  { %123 = vsyncadd [#allocation4], 4294966272  ;;  %v23_v0 = vld [vmem:[#allocation3] sm:$0xff]  ;;  %v25_v2 = vld [vmem:[#allocation3 + $0x10] sm:$0xff]  ;;  %s129_s13 = smov [#allocation6]  }
   0xf   :  { %v40_v1 = vld [vmem:[#allocation3 + $0x1] ss:$2 sm:$0xf]  ;;  %s64_s14 = sshll.u32 %s129_s13, 4  ;;  %v29_v6 = vld [vmem:[#allocation3 + $0x30] sm:$0xff]  ;;  %s65_s14 = int_to_ptr.vmem [resolvable:$true] %s64_s14 }
  0x10   :  { %v51_v3 = vadd.f32 %v40_v1, %v23_v0  ;;  %v42_v4 = vld [vmem:[#allocation3 + $0x9] ss:$2 sm:$0xf]  ;;  %v27_v5 = vld [vmem:[#allocation3 + $0x20] sm:$0xff]  ;;  %s102_s0 = scalar_lea.vmem %s65_s14, 256  ;;  %p107_p6 = scmp.lt.s32.totalorder %s65_s14, %s65_s14 }
  0x11   :  { %v52_v7 = vadd.f32 %v42_v4, %v25_v2  ;;  %v44_v8 = vld [vmem:[#allocation3 + $0x11] ss:$2 sm:$0xf]  ;;  %v46_v9 = vld [vmem:[#allocation3 + $0x19] ss:$2 sm:$0xf]  ;;  %p103_p5 = scmp.ne.s32.totalorder %s65_s14, %s102_s0  ;;  %p108_p7 = scmp.lt.s32.totalorder %s102_s0, %s102_s0 }
  0x12   :  { %55 = vst [vmem:[#allocation6] sm:$0xf] %v51_v3  ;;  %v53_v10 = vadd.f32 %v44_v8, %v27_v5  ;;  %v54_v11 = vadd.f32 %v46_v9, %v29_v6 }
  0x13   :  { %56 = vst [vmem:[#allocation6 + $0x4] sm:$0xf] %v52_v7  ;;  %p109_p8 = por %p108_p7, %p107_p6 }
  0x14   :  { %57 = vst [vmem:[#allocation6 + $0x8] sm:$0xf] %v53_v10  ;;  %58 = vst [vmem:[#allocation6 + $0xc] sm:$0xf] %v54_v11 }
  0x15   :  { %p110_p9 = pnand %p109_p8, %p103_p5 }
  0x17   :  { %113 = shalt.err (!%p110_p9)
}
  0x18   :  { %s130_s15 = smov 64   ;;  %s131_s16 = smov 4  }
  0x19   :  { %70 = dma.vmem_to_hbm [thread:$0]  %s65_s14, 256, %s149_s1, [#allocation5], %s130_s15, %s130_s15, %s131_s16  }
  0x1a   :  { %124 = dma.done.wait [#allocation5], 256  }
  0x1b   :  { %125 = vsyncadd [#allocation5], 4294967040 }
  0x1c   :  { %74 = vsyncpa [#allocation4], 1 }
  0x1d   :  { %75 = vsyncpa [#allocation5], 1 }

// kernel: tpu_custom_call.1
= control target key start
LH: loop header
LB: loop body
LE: loop exit
PB: predicated region body
PF: predicated region fallthrough
CT: control target
= control target key end

     0   :  { %8 = vsyncpa [#allocation3], 0  ;;  %s1644_s0 = inlined_call_operand.hbm [shape: bf16[2,16,16,27], index: 0, kind: input, shape index: {}]   ;;  %s1645_s1 = inlined_call_operand.hbm [shape: bf16[27,32], index: 1, kind: input, shape index: {}]   ;;  %s1646_s2 = inlined_call_operand.vmem [shape: f32[1,32], index: 2, kind: input, shape index: {}]   ;;  %s1647_s3 = inlined_call_operand.hbm [shape: bf16[2,16,16,32], index: 3, kind: output, shape index: {}]  }
   0x1   :  { %10 = vsyncpa [#allocation3 + $0x1], 0 }
   0x2   :  { %11 = vsyncpa [#allocation6], 0 }
   0x3   :  { %12 = vsyncpa [#allocation4], 0 }
   0x4   :  { %14 = vsyncpa [#allocation4 + $0x1], 0  ;;  %s1317_s12 = smov 0   ;;  %s1319_s13 = smov 0  }
   0x5   :  { %s1321_s14 = smov 0   ;;  %s1323_s15 = smov 0  }
   0x6 LB: > { %s1338_s16 = sadd.s32 4294967295, %s1287_s15   ;;  %s910_s17 = sadd.s32 4294967294, %s1287_s15   ;;  %s1287_s15 = sphi %s1323_s15, %s1669_s15   ;;  %s1283_s14 = sphi %s1321_s14, %s1668_s14   ;;  %s1279_s13 = sphi %s1319_s13, %s1667_s13   ;;  %s1275_s12 = sphi %s1317_s12, %s1666_s12  }
   0x7   : > { %p40_p0 = scmp.ne.s32.totalorder %s1279_s13, %s1275_s12  ;;  %p1648_p1 = scmp.eq.s32.totalorder %s1338_s16, 0 }
   0x8   : > { %p112_p3 = scmp.eq.s32.totalorder %s910_s17, 1  ;;  %p911_p5 = scmp.ge.s32.totalorder %s1287_s15, 1 }
   0x9   : > { %p1347_p4 = por %p1648_p1, %p40_p0  ;;  %p119_p7 = scmp.lt.s32.totalorder %s1287_s15, 3 }
   0xa   : > { %p1352_p6 = por %p112_p3, %p40_p0  ;;  %s1289_s21 = smov [#allocation5]  }
   0xb   : > { %s1652_s18 = scalar_select %p1347_p4, 1, 0 }
   0xc   : > { %s1653_s19 = scalar_select %p1352_p6, 1, 0 }
   0xd   : > { %p1357_p8 = pnand %p911_p5, %p119_p7  ;;  %s131_s22 = sshll.u32 %s1289_s21, 4  ;;  %s132_s22 = int_to_ptr.vmem [resolvable:$true] %s131_s22 }
   0xe   : > { %s1371_s24 = sadd.s32 1, %s1287_s15   ;;  %s27_s25 = sadd.s32 1, %s1283_s14 }
   0xf   : > { %s1654_s20 = scalar_select %p1357_p8, 1, 0 }
  0x10   : > { %p1093_p9 = pneg %p1357_p8  ;;  %s24_s26 = ssub.s32 %s1287_s15, %s1371_s24 }
  0x11   : > { %s1176_s27 = scalar_lea.vmem %s132_s22, 256  ;;  %p1184_p5 = scmp.lt.s32.totalorder %s132_s22, %s132_s22 }
  0x12   : > { %p1366_p11 = pnand %p1093_p9, %p1648_p1  ;;  %p1177_p13 = scmp.ne.s32.totalorder %s132_s22, %s1176_s27 }
  0x13   : > { %p1185_p7 = scmp.lt.s32.totalorder %s1176_s27, %s1176_s27 }
  0x14   : > { %p1167_p12 = pneg %p1366_p11 }
  0x15   : > { %p1186_p10 = por %p1185_p7, %p1184_p5 }
  0x16   : > { %p1179_p0 = pnand %p1177_p13, %p1167_p12 }
  0x18   : > { %p1180_p3 = pneg %p1179_p0 }
  0x1a   : > { %p1187_p2 = pnand %p1186_p10, %p1180_p3 }
  0x1c   : > { %1190 = shalt.err (!%p1187_p2)
}
  0x1d   : > { %s1290_s28 = smov 64   ;;  %s1291_s29 = smov 4  }
  0x1e   : > { %1096 = dma.hbm_to_vmem [thread:$0]  (!%p1366_p11), %s1645_s1, 256, %s132_s22, [#allocation6], %s1290_s28, %s1290_s28, %s1291_s29  }
  0x1f   : > { %p25_p2 = scmp.eq.s32.totalorder %s24_s26, 0  ;;  %p34_p9 = scmp.ne.s32.totalorder %s1283_s14, %s1279_s13 }
  0x20   : > { %p35_p10 = scmp.eq.s32.totalorder %s1287_s15, 0  ;;  %p1106_p12 = scmp.lt.s32.totalorder %s1287_s15, 2 }
  0x21   : > { %s1391_s5 = scalar_select %p25_p2, %s1283_s14, %s27_s25  }
  0x22   : > { %p36_p13 = por %p35_p10, %p34_p9  ;;  %p1656_p0 = scmp.eq.s32.totalorder %s1338_s16, 1 }
  0x23   : > { %s148_s7 = sand.u32 1, %s1283_s14   ;;  %s993_s8 = sshll.u32 %s1287_s15, 11 }
  0x24   : > { %p1395_p3 = por %p1656_p0, %p34_p9  ;;  %s914_s9 = sshll.u32 %s148_s7, 7 }
  0x25   : > { %s1404_s17 = scalar_lea.hbm %s1644_s0, %s993_s8  ;;  %s152_s21 = scalar_lea.vmem [#allocation2], %s914_s9 }
  0x26   : > { %s1657_s6 = scalar_select %p1395_p3, 1, 0 }
  0x27   : > { %s159_s22 = sshll.u32 %s152_s21, 4  ;;  %p1406_p11 = pnand %p1106_p12, %p36_p13  ;;  %s1410_s22 = int_to_ptr.vmem [resolvable:$true] %s159_s22 }
  0x28   : > { %s1412_s25 = scalar_lea.sflag [#allocation3], %s148_s7  ;;  %s1191_s26 = scalar_lea.hbm %s1404_s17, 2048 }
  0x29   : > { %p1192_p5 = scmp.ne.s32.totalorder %s1404_s17, %s1191_s26  ;;  %p1193_p7 = pneg %p1406_p11 }
  0x2a   : > { %s1196_s4 = scalar_lea.hbm %s1644_s0, 4096  ;;  %p1197_p10 = scmp.lt.s32.totalorder %s1404_s17, %s1644_s0 }
  0x2b   : > { %p1194_p2 = pnand %p1193_p7, %p1192_p5  ;;  %p1198_p12 = scmp.lt.s32.totalorder %s1196_s4, %s1191_s26 }
  0x2d   : > { %p1195_p9 = pneg %p1194_p2  ;;  %p1199_p13 = por %p1198_p12, %p1197_p10 }
  0x2f   : > { %p1200_p0 = pnand %p1199_p13, %p1195_p9 }
  0x31   : > { %1203 = shalt.err (!%p1200_p0)
}
  0x32   : > { %s1204_s7 = scalar_lea.vmem %s1410_s22, 2048  ;;  %s1292_s10 = smov [#allocation2]  }
  0x33   : > { %p1205_p1 = scmp.ne.s32.totalorder %s1410_s22, %s1204_s7  ;;  %s1209_s11 = sshll.u32 %s1292_s10, 4  ;;  %s1210_s11 = int_to_ptr.vmem [resolvable:$false] %s1209_s11 }
  0x34   : > { %s1211_s21 = scalar_lea.vmem %s1210_s11, 4096  ;;  %p1212_p2 = scmp.lt.s32.totalorder %s1410_s22, %s1210_s11 }
  0x35   : > { %p1207_p6 = pnand %p1205_p1, %p1193_p7  ;;  %p1213_p3 = scmp.lt.s32.totalorder %s1211_s21, %s1204_s7 }
  0x37   : > { %p1208_p5 = pneg %p1207_p6  ;;  %p1214_p4 = por %p1213_p3, %p1212_p2 }
  0x39   : > { %p1215_p8 = pnand %p1214_p4, %p1208_p5 }
  0x3b   : > { %1218 = shalt.err (!%p1215_p8)
}
  0x3c   : > { %1100 = dma.hbm_to_vmem [thread:$0]  (!%p1406_p11), %s1404_s17, 2048, %s1410_s22, %s1412_s25, %s1290_s28, %s1290_s28, %s1291_s29  }
  0x3d   : > { %p1659_p1 = scmp.ne.s32.totalorder %s1654_s20, 0 }
  0x3e   : > { %s1439_s26 = sand.u32 (!%p1659_p1), 1, %s1279_s13   ;;  %p1660_p4 = scmp.ne.s32.totalorder (!%p1659_p1), %s1652_s18, 0 }
  0x3f   : > { %171 = sbr.rel (%p1659_p1) target bundleno = 338 (0x152), region = 32  ;;  %s918_s27 = sshll.u32 (!%p1659_p1), %s1439_s26, 7 }
  0x40   : > { %s174_s30 = scalar_lea.sflag (!%p1659_p1), [#allocation3], %s1439_s26  ;;  %s1445_s23 = scalar_lea.vmem (!%p1659_p1), [#allocation2], %s918_s27 }
  0x44   : > { %1262 = dma.done.wait (%p1660_p4), %s174_s30, 2048  }
  0x45   : > { %1264 = vsyncadd (%p1660_p4), %s174_s30, 4294965248  ;;  %p1661_p6 = scmp.eq.s32.totalorder %s1338_s16, 0 }
  0x47   : > { %1266 = dma.done.wait (%p1661_p6), [#allocation6], 256   ;;  %p1662_p8 = pmov %p1661_p6 }
  0x48   : > { %vm388_vm0 = vcmask 1044480   ;;  %vm389_vm1 = vcmask 1045504   ;;  %v1293_v0 = vmov 65535   ;;  %v1147_v3 = vld [vmem:[#allocation5 + $0x8] sm:$0x3f]   ;;  %v1148_v4 = vld [vmem:[#allocation5] sm:$0xff]  }
  0x49   : > { %1268 = vsyncadd (%p1662_p8), [#allocation6], 4294967040  ;;  %v390_v1 = vsel %vm388_vm0, 4294967295, %v1293_v0  ;;  %v1149_v6 = vld [vmem:[%s1445_s23] sm:$0xff]   ;;  %vm339_vm2 = vcmask 220160   ;;  %v1151_v8 = vld [vmem:[%s1445_s23 + $0x8] sm:$0xff]  }
  0x4a   : > { %v391_v2 = vsel %vm389_vm1, %v390_v1, 0  ;;  %v1150_v7 = vld [vmem:[%s1445_s23 + $0x40] sm:$0xff]   ;;  %1049 = vmatprep.mubr.msk.bf16.mxu0 %vm339_vm2, %v1149_v6  ;;  %v1152_v9 = vld [vmem:[%s1445_s23 + $0x48] sm:$0xff]   ;;  %v1153_v10 = vld [vmem:[%s1445_s23 + $0x10] sm:$0xff]   ;;  %vm780_vm5 = vcmask 257024   ;;  %s1500_s28 = scalar_lea.vmem [#allocation7], %s918_s27 }
  0x4b   : > { %v393_v5 = vand.u32 %v1147_v3, %v391_v2  ;;  %1065 = vmatprep.mubr.msk.bf16.mxu1 %vm339_vm2, %v1150_v7  ;;  %v1154_v11 = vld [vmem:[%s1445_s23 + $0x50] sm:$0xff]   ;;  %v1155_v12 = vld [vmem:[%s1445_s23 + $0x18] sm:$0xff]   ;;  %v1157_v14 = vld [vmem:[%s1445_s23 + $0x20] sm:$0xff]   ;;  %s1026_s29 = sshll.u32 %s1338_s16, 11  ;;  %s827_s17 = sshll.u32 %s1500_s28, 4  ;;  %s1595_s17 = int_to_ptr.vmem [resolvable:$true] %s827_s17 }
  0x4c   : > { %v1156_v13 = vld [vmem:[%s1445_s23 + $0x58] sm:$0xff]   ;;  %v1158_v15 = vld [vmem:[%s1445_s23 + $0x60] sm:$0xff]   ;;  %v1159_v16 = vld [vmem:[%s1445_s23 + $0x28] sm:$0xff]   ;;  %s1593_s25 = scalar_lea.hbm %s1647_s3, %s1026_s29  ;;  %s814_s4 = scalar_lea.sflag [#allocation4], %s1439_s26 }
  0x4d   : > { %1045 = vmatprep.subr.bf16.mxu0 %v393_v5  ;;  %1081 = vmatprep.subr.bf16.mxu1 %v393_v5  ;;  %v1160_v17 = vld [vmem:[%s1445_s23 + $0x68] sm:$0xff]   ;;  %v1161_v18 = vld [vmem:[%s1445_s23 + $0x30] sm:$0xff]   ;;  %v1163_v20 = vld [vmem:[%s1445_s23 + $0x38] sm:$0xff]   ;;  %s1219_s8 = scalar_lea.vmem %s1595_s17, 2048  ;;  %p1663_p11 = scmp.ne.s32.totalorder %s1657_s6, 0 }
  0x4e   : > { %1046 = vmatpush3.bf16.msra.mxu0 %v393_v5  ;;  %1083 = vmatpush3.bf16.msra.mxu1 %v393_v5  ;;  %v1162_v19 = vld [vmem:[%s1445_s23 + $0x70] sm:$0xff]   ;;  %v1164_v21 = vld [vmem:[%s1445_s23 + $0x78] sm:$0xff]   ;;  %v1490_v22 = vld [vmem:[%s1646_s2] ss:$0 sm:$0xff]  ;;  %p1220_p3 = scmp.ne.s32.totalorder %s1595_s17, %s1219_s8  ;;  %s1294_s9 = smov [#allocation7]  }
  0x4f   : > { %1047 = vmatprep.subr.bf16.mxu0 %v1148_v4  ;;  %1082 = vmatprep.subr.bf16.mxu1 %v1148_v4  ;;  %s1223_s7 = sshll.u32 %s1294_s9, 4  ;;  %s1224_s7 = int_to_ptr.vmem [resolvable:$false] %s1223_s7 }
  0x50   : > { %p1221_p7 = pnand %p1220_p3, %p1663_p11  ;;  %s1225_s10 = scalar_lea.vmem %s1224_s7, 4096 }
  0x51   : > { %p1226_p10 = scmp.lt.s32.totalorder %s1595_s17, %s1224_s7  ;;  %p1227_p12 = scmp.lt.s32.totalorder %s1225_s10, %s1219_s8 }
  0x52   : > { %1048 = vmatpush3.bf16.msra.mxu0 %v1148_v4  ;;  %1084 = vmatpush3.bf16.msra.mxu1 %v1148_v4  ;;  %p1222_p9 = pneg %p1221_p7 }
  0x53   : > { %p1228_p13 = por %p1227_p12, %p1226_p10 }
  0x55   : > { %1050 = vmatmul.mubr.msk.bf16.vlgmr.msra.gmra.mxu0 %vm339_vm2, %v1151_v8  ;;  %1066 = vmatmul.mubr.msk.bf16.vlgmr.msra.gmra.mxu1 %vm339_vm2, %v1152_v9  ;;  %p1229_p0 = pnand %p1228_p13, %p1222_p9 }
  0x56   : > { %1053 = vmatprep.mubr.msk.bf16.mxu0 %vm339_vm2, %v1153_v10  ;;  %1069 = vmatprep.mubr.msk.bf16.mxu1 %vm339_vm2, %v1154_v11 }
  0x5d   : > { %1054 = vmatmul.mubr.msk.bf16.gmra.mxu0 %vm339_vm2, %v1155_v12  ;;  %1070 = vmatmul.mubr.msk.bf16.gmra.mxu1 %vm339_vm2, %v1156_v13 }
  0x5e   : > { %1057 = vmatprep.mubr.msk.bf16.mxu0 %vm339_vm2, %v1157_v14  ;;  %1073 = vmatprep.mubr.msk.bf16.mxu1 %vm339_vm2, %v1158_v15 }
  0x65   : > { %1058 = vmatmul.mubr.msk.bf16.gmra.mxu0 %vm339_vm2, %v1159_v16  ;;  %1074 = vmatmul.mubr.msk.bf16.gmra.mxu1 %vm339_vm2, %v1160_v17 }
  0x66   : > { %1061 = vmatprep.mubr.msk.bf16.mxu0 %vm339_vm2, %v1161_v18  ;;  %1077 = vmatprep.mubr.msk.bf16.mxu1 %vm339_vm2, %v1162_v19 }
  0x6d   : > { %1062 = vmatmul.mubr.msk.bf16.gmra.mxu0 %vm339_vm2, %v1163_v20  ;;  %1078 = vmatmul.mubr.msk.bf16.gmra.mxu1 %vm339_vm2, %v1164_v21 }
 0x115   : > { %v1051_v23 = vpop.f32.mrf.mxu0  ;;  %v1067_v24 = vpop.f32.mrf.mxu1 }
 0x116   : > { %v438_v25 = vadd.f32 %v1051_v23, %v1490_v22  ;;  %v502_v26 = vadd.f32 %v1067_v24, %v1490_v22 }
 0x117   : > { %v429_v27 = vpop.f32.mrf.mxu0  ;;  %v493_v28 = vpop.f32.mrf.mxu1 }
 0x118   : > { %vm558_vm3 = vcmp.ge.f32.partialorder %v438_v25, 0.0  ;;  %v590_v29 = vmul.f32 0.1, %v438_v25  ;;  %vm574_vm4 = vcmp.ge.f32.partialorder %v502_v26, 0.0  ;;  %v606_v30 = vmul.f32 0.1, %v502_v26 }
 0x119   : > { %v430_v31 = vadd.f32 %v1490_v22, %v429_v27  ;;  %v494_v32 = vadd.f32 %v1490_v22, %v493_v28  ;;  %v1052_v33 = vpop.f32.mrf.mxu0  ;;  %v1068_v34 = vpop.f32.mrf.mxu1 }
 0x11a   : > { %v622_v35 = vsel %vm558_vm3, %v438_v25, %v590_v29  ;;  %v638_v36 = vsel %vm574_vm4, %v502_v26, %v606_v30  ;;  %v441_v37 = vadd.f32 %v1052_v33, %v1490_v22  ;;  %v505_v38 = vadd.f32 %v1068_v34, %v1490_v22 }
 0x11b   : > { %v996_v39 = vpack.c.bf16 %v622_v35, %v622_v35  ;;  %v1012_v40 = vpack.c.bf16 %v638_v36, %v638_v36  ;;  %vm556_vm6 = vcmp.ge.f32.partialorder %v430_v31, 0.0  ;;  %v588_v41 = vmul.f32 0.1, %v430_v31  ;;  %v432_v42 = vpop.f32.mrf.mxu0  ;;  %v496_v43 = vpop.f32.mrf.mxu1 }
 0x11c   : > { %vm572_vm7 = vcmp.ge.f32.partialorder %v494_v32, 0.0  ;;  %v604_v44 = vmul.f32 0.1, %v494_v32  ;;  %vm559_vm8 = vcmp.ge.f32.partialorder %v441_v37, 0.0  ;;  %v591_v45 = vmul.f32 0.1, %v441_v37 }
 0x11d   : > { %783 = vst.msk [vmem:[%s1500_s28 + $0x8] sm:$0xf] %vm780_vm5, %v996_v39  ;;  %799 = vst.msk [vmem:[%s1500_s28 + $0x48] sm:$0xf] %vm780_vm5, %v1012_v40  ;;  %v620_v46 = vsel %vm556_vm6, %v430_v31, %v588_v41  ;;  %vm575_vm9 = vcmp.ge.f32.partialorder %v505_v38, 0.0  ;;  %v433_v48 = vadd.f32 %v1490_v22, %v432_v42  ;;  %v1055_v49 = vpop.f32.mrf.mxu0  ;;  %v1071_v50 = vpop.f32.mrf.mxu1  ;;  %v497_v54 = vadd.f32 %v1490_v22, %v496_v43 }
 0x11e   : > { %v607_v47 = vmul.f32 0.1, %v505_v38  ;;  %v994_v51 = vpack.c.bf16 %v620_v46, %v620_v46  ;;  %v636_v52 = vsel %vm572_vm7, %v494_v32, %v604_v44  ;;  %v623_v53 = vsel %vm559_vm8, %v441_v37, %v591_v45 }
 0x11f   : > { %v1010_v55 = vpack.c.bf16 %v636_v52, %v636_v52  ;;  %v997_v56 = vpack.c.bf16 %v623_v53, %v623_v53  ;;  %vm557_vm10 = vcmp.ge.f32.partialorder %v433_v48, 0.0  ;;  %v445_v58 = vpop.f32.mrf.mxu0  ;;  %v509_v59 = vpop.f32.mrf.mxu1  ;;  %v589_v61 = vmul.f32 0.1, %v433_v48 }
 0x120   : > { %v639_v57 = vsel %vm575_vm9, %v505_v38, %v607_v47  ;;  %781 = vst.msk [vmem:[%s1500_s28] sm:$0xf] %vm780_vm5, %v994_v51  ;;  %vm573_vm11 = vcmp.ge.f32.partialorder %v497_v54, 0.0  ;;  %v605_v62 = vmul.f32 0.1, %v497_v54  ;;  %v454_v63 = vadd.f32 %v1055_v49, %v1490_v22 }
 0x121   : > { %v1013_v60 = vpack.c.bf16 %v639_v57, %v639_v57  ;;  %797 = vst.msk [vmem:[%s1500_s28 + $0x40] sm:$0xf] %vm780_vm5, %v1010_v55  ;;  %784 = vst.msk [vmem:[%s1500_s28 + $0xc] sm:$0xf] %vm780_vm5, %v997_v56  ;;  %v518_v0 = vadd.f32 %v1071_v50, %v1490_v22  ;;  %v446_v1 = vadd.f32 %v1490_v22, %v445_v58  ;;  %v1056_v3 = vpop.f32.mrf.mxu0  ;;  %v1072_v4 = vpop.f32.mrf.mxu1 }
 0x122   : > { %v510_v2 = vadd.f32 %v1490_v22, %v509_v59  ;;  %v621_v5 = vsel %vm557_vm10, %v433_v48, %v589_v61  ;;  %v637_v6 = vsel %vm573_vm11, %v497_v54, %v605_v62  ;;  %v457_v7 = vadd.f32 %v1056_v3, %v1490_v22 }
 0x123   : > { %800 = vst.msk [vmem:[%s1500_s28 + $0x4c] sm:$0xf] %vm780_vm5, %v1013_v60  ;;  %v521_v8 = vadd.f32 %v1072_v4, %v1490_v22  ;;  %v995_v9 = vpack.c.bf16 %v621_v5, %v621_v5  ;;  %v1011_v10 = vpack.c.bf16 %v637_v6, %v637_v6  ;;  %vm562_vm12 = vcmp.ge.f32.partialorder %v454_v63, 0.0  ;;  %v448_v12 = vpop.f32.mrf.mxu0  ;;  %v512_v13 = vpop.f32.mrf.mxu1 }
 0x124   : > { %v594_v11 = vmul.f32 0.1, %v454_v63  ;;  %vm578_vm13 = vcmp.ge.f32.partialorder %v518_v0, 0.0  ;;  %v610_v14 = vmul.f32 0.1, %v518_v0  ;;  %vm560_vm14 = vcmp.ge.f32.partialorder %v446_v1, 0.0 }
 0x125   : > { %v592_v15 = vmul.f32 0.1, %v446_v1  ;;  %782 = vst.msk [vmem:[%s1500_s28 + $0x4] sm:$0xf] %vm780_vm5, %v995_v9  ;;  %798 = vst.msk [vmem:[%s1500_s28 + $0x44] sm:$0xf] %vm780_vm5, %v1011_v10  ;;  %v1059_v18 = vpop.f32.mrf.mxu0  ;;  %v1075_v19 = vpop.f32.mrf.mxu1  ;;  %v449_v33 = vadd.f32 %v1490_v22, %v448_v12  ;;  %v513_v35 = vadd.f32 %v1490_v22, %v512_v13 }
 0x126   : > { %v626_v16 = vsel %vm562_vm12, %v454_v63, %v594_v11  ;;  %vm576_vm15 = vcmp.ge.f32.partialorder %v510_v2, 0.0  ;;  %v608_v17 = vmul.f32 0.1, %v510_v2  ;;  %vm563_vm0 = vcmp.ge.f32.partialorder %v457_v7, 0.0 }
 0x127   : > { %v1000_v20 = vpack.c.bf16 %v626_v16, %v626_v16  ;;  %v642_v21 = vsel %vm578_vm13, %v518_v0, %v610_v14  ;;  %v624_v23 = vsel %vm560_vm14, %v446_v1, %v592_v15  ;;  %v595_v24 = vmul.f32 0.1, %v457_v7  ;;  %v461_v28 = vpop.f32.mrf.mxu0  ;;  %v525_v29 = vpop.f32.mrf.mxu1 }
 0x128   : > { %v1016_v25 = vpack.c.bf16 %v642_v21, %v642_v21  ;;  %v998_v26 = vpack.c.bf16 %v624_v23, %v624_v23  ;;  %v640_v27 = vsel %vm576_vm15, %v510_v2, %v608_v17  ;;  %vm579_vm1 = vcmp.ge.f32.partialorder %v521_v8, 0.0 }
 0x129   : > { %787 = vst.msk [vmem:[%s1500_s28 + $0x18] sm:$0xf] %vm780_vm5, %v1000_v20  ;;  %v1014_v30 = vpack.c.bf16 %v640_v27, %v640_v27  ;;  %v627_v31 = vsel %vm563_vm0, %v457_v7, %v595_v24  ;;  %v611_v32 = vmul.f32 0.1, %v521_v8  ;;  %v470_v36 = vadd.f32 %v1059_v18, %v1490_v22  ;;  %v1060_v38 = vpop.f32.mrf.mxu0  ;;  %v1076_v39 = vpop.f32.mrf.mxu1 }
 0x12a   : > { %803 = vst.msk [vmem:[%s1500_s28 + $0x58] sm:$0xf] %vm780_vm5, %v1016_v25  ;;  %785 = vst.msk [vmem:[%s1500_s28 + $0x10] sm:$0xf] %vm780_vm5, %v998_v26  ;;  %v1001_v34 = vpack.c.bf16 %v627_v31, %v627_v31  ;;  %v534_v37 = vadd.f32 %v1075_v19, %v1490_v22  ;;  %vm561_vm2 = vcmp.ge.f32.partialorder %v449_v33, 0.0  ;;  %v462_v42 = vadd.f32 %v1490_v22, %v461_v28 }
 0x12b   : > { %801 = vst.msk [vmem:[%s1500_s28 + $0x50] sm:$0xf] %vm780_vm5, %v1014_v30  ;;  %v643_v40 = vsel %vm579_vm1, %v521_v8, %v611_v32  ;;  %v593_v41 = vmul.f32 0.1, %v449_v33  ;;  %vm577_vm3 = vcmp.ge.f32.partialorder %v513_v35, 0.0  ;;  %vm566_vm4 = vcmp.ge.f32.partialorder %v470_v36, 0.0  ;;  %v464_v45 = vpop.f32.mrf.mxu0  ;;  %v528_v46 = vpop.f32.mrf.mxu1 }
 0x12c   : > { %788 = vst.msk [vmem:[%s1500_s28 + $0x1c] sm:$0xf] %vm780_vm5, %v1001_v34  ;;  %v1017_v43 = vpack.c.bf16 %v643_v40, %v643_v40  ;;  %v609_v44 = vmul.f32 0.1, %v513_v35  ;;  %v598_v48 = vmul.f32 0.1, %v470_v36  ;;  %v526_v58 = vadd.f32 %v1490_v22, %v525_v29 }
 0x12d   : > { %v625_v47 = vsel %vm561_vm2, %v449_v33, %v593_v41  ;;  %vm582_vm6 = vcmp.ge.f32.partialorder %v534_v37, 0.0  ;;  %v614_v49 = vmul.f32 0.1, %v534_v37  ;;  %vm564_vm7 = vcmp.ge.f32.partialorder %v462_v42, 0.0  ;;  %v1063_v53 = vpop.f32.mrf.mxu0  ;;  %v1079_v54 = vpop.f32.mrf.mxu1 }
 0x12e   : > { %804 = vst.msk [vmem:[%s1500_s28 + $0x5c] sm:$0xf] %vm780_vm5, %v1017_v43  ;;  %v999_v50 = vpack.c.bf16 %v625_v47, %v625_v47  ;;  %v641_v51 = vsel %vm577_vm3, %v513_v35, %v609_v44  ;;  %v596_v52 = vmul.f32 0.1, %v462_v42  ;;  %v630_v56 = vsel %vm566_vm4, %v470_v36, %v598_v48 }
 0x12f   : > { %v1015_v55 = vpack.c.bf16 %v641_v51, %v641_v51  ;;  %v646_v57 = vsel %vm582_vm6, %v534_v37, %v614_v49  ;;  %v1004_v59 = vpack.c.bf16 %v630_v56, %v630_v56  ;;  %v473_v62 = vadd.f32 %v1060_v38, %v1490_v22  ;;  %v477_v63 = vpop.f32.mrf.mxu0  ;;  %v541_v3 = vpop.f32.mrf.mxu1 }
 0x130   : > { %786 = vst.msk [vmem:[%s1500_s28 + $0x14] sm:$0xf] %vm780_vm5, %v999_v50  ;;  %v1020_v60 = vpack.c.bf16 %v646_v57, %v646_v57  ;;  %v628_v61 = vsel %vm564_vm7, %v462_v42, %v596_v52  ;;  %vm580_vm8 = vcmp.ge.f32.partialorder %v526_v58, 0.0  ;;  %v612_v1 = vmul.f32 0.1, %v526_v58 }
 0x131   : > { %802 = vst.msk [vmem:[%s1500_s28 + $0x54] sm:$0xf] %vm780_vm5, %v1015_v55  ;;  %v1002_v0 = vpack.c.bf16 %v628_v61, %v628_v61  ;;  %v537_v2 = vadd.f32 %v1076_v39, %v1490_v22  ;;  %791 = vst.msk [vmem:[%s1500_s28 + $0x28] sm:$0xf] %vm780_vm5, %v1004_v59  ;;  %vm567_vm9 = vcmp.ge.f32.partialorder %v473_v62, 0.0  ;;  %v465_v5 = vadd.f32 %v1490_v22, %v464_v45  ;;  %v1064_v13 = vpop.f32.mrf.mxu0  ;;  %v1080_v17 = vpop.f32.mrf.mxu1 }
 0x132   : > { %807 = vst.msk [vmem:[%s1500_s28 + $0x68] sm:$0xf] %vm780_vm5, %v1020_v60  ;;  %v599_v4 = vmul.f32 0.1, %v473_v62  ;;  %v529_v6 = vadd.f32 %v1490_v22, %v528_v46  ;;  %v644_v7 = vsel %vm580_vm8, %v526_v58, %v612_v1  ;;  %v486_v9 = vadd.f32 %v1063_v53, %v1490_v22 }
 0x133   : > { %789 = vst.msk [vmem:[%s1500_s28 + $0x20] sm:$0xf] %vm780_vm5, %v1002_v0  ;;  %vm583_vm10 = vcmp.ge.f32.partialorder %v537_v2, 0.0  ;;  %v615_v8 = vmul.f32 0.1, %v537_v2  ;;  %v1018_v10 = vpack.c.bf16 %v644_v7, %v644_v7  ;;  %vm565_vm11 = vcmp.ge.f32.partialorder %v465_v5, 0.0  ;;  %v480_v30 = vpop.f32.mrf.mxu0  ;;  %v544_v33 = vpop.f32.mrf.mxu1 }
 0x134   : > { %v631_v11 = vsel %vm567_vm9, %v473_v62, %v599_v4  ;;  %v597_v12 = vmul.f32 0.1, %v465_v5  ;;  %vm581_vm12 = vcmp.ge.f32.partialorder %v529_v6, 0.0  ;;  %v613_v16 = vmul.f32 0.1, %v529_v6 }
 0x135   : > { %v1005_v14 = vpack.c.bf16 %v631_v11, %v631_v11  ;;  %v647_v15 = vsel %vm583_vm10, %v537_v2, %v615_v8  ;;  %805 = vst.msk [vmem:[%s1500_s28 + $0x60] sm:$0xf] %vm780_vm5, %v1018_v10  ;;  %vm570_vm13 = vcmp.ge.f32.partialorder %v486_v9, 0.0  ;;  %v602_v20 = vmul.f32 0.1, %v486_v9 }
 0x136   : > { %v1021_v18 = vpack.c.bf16 %v647_v15, %v647_v15  ;;  %v629_v19 = vsel %vm565_vm11, %v465_v5, %v597_v12  ;;  %v645_v23 = vsel %vm581_vm12, %v529_v6, %v613_v16  ;;  %v550_v24 = vadd.f32 %v1079_v54, %v1490_v22 }
 0x137   : > { %792 = vst.msk [vmem:[%s1500_s28 + $0x2c] sm:$0xf] %vm780_vm5, %v1005_v14  ;;  %v1003_v21 = vpack.c.bf16 %v629_v19, %v629_v19  ;;  %v478_v25 = vadd.f32 %v1490_v22, %v477_v63  ;;  %v1019_v26 = vpack.c.bf16 %v645_v23, %v645_v23  ;;  %v634_v27 = vsel %vm570_vm13, %v486_v9, %v602_v20 }
 0x138   : > { %808 = vst.msk [vmem:[%s1500_s28 + $0x6c] sm:$0xf] %vm780_vm5, %v1021_v18  ;;  %v542_v28 = vadd.f32 %v1490_v22, %v541_v3  ;;  %v489_v29 = vadd.f32 %v1064_v13, %v1490_v22  ;;  %v1008_v31 = vpack.c.bf16 %v634_v27, %v634_v27  ;;  %vm586_vm14 = vcmp.ge.f32.partialorder %v550_v24, 0.0 }
 0x139   : > { %790 = vst.msk [vmem:[%s1500_s28 + $0x24] sm:$0xf] %vm780_vm5, %v1003_v21  ;;  %v618_v32 = vmul.f32 0.1, %v550_v24  ;;  %vm568_vm15 = vcmp.ge.f32.partialorder %v478_v25, 0.0  ;;  %v553_v38 = vadd.f32 %v1080_v17, %v1490_v22  ;;  %v481_v39 = vadd.f32 %v1490_v22, %v480_v30 }
 0x13a   : > { %806 = vst.msk [vmem:[%s1500_s28 + $0x64] sm:$0xf] %vm780_vm5, %v1019_v26  ;;  %v600_v34 = vmul.f32 0.1, %v478_v25  ;;  %vm584_vm0 = vcmp.ge.f32.partialorder %v542_v28, 0.0  ;;  %vm571_vm1 = vcmp.ge.f32.partialorder %v489_v29, 0.0  ;;  %v545_v43 = vadd.f32 %v1490_v22, %v544_v33 }
 0x13b   : > { %v616_v35 = vmul.f32 0.1, %v542_v28  ;;  %795 = vst.msk [vmem:[%s1500_s28 + $0x38] sm:$0xf] %vm780_vm5, %v1008_v31  ;;  %v650_v36 = vsel %vm586_vm14, %v550_v24, %v618_v32  ;;  %v603_v37 = vmul.f32 0.1, %v489_v29 }
 0x13c   : > { %v1024_v40 = vpack.c.bf16 %v650_v36, %v650_v36  ;;  %v632_v41 = vsel %vm568_vm15, %v478_v25, %v600_v34  ;;  %vm587_vm2 = vcmp.ge.f32.partialorder %v553_v38, 0.0  ;;  %v619_v48 = vmul.f32 0.1, %v553_v38 }
 0x13d   : > { %v648_v42 = vsel %vm584_vm0, %v542_v28, %v616_v35  ;;  %v1006_v44 = vpack.c.bf16 %v632_v41, %v632_v41  ;;  %v635_v46 = vsel %vm571_vm1, %v489_v29, %v603_v37  ;;  %vm569_vm3 = vcmp.ge.f32.partialorder %v481_v39, 0.0 }
 0x13e   : > { %v1022_v45 = vpack.c.bf16 %v648_v42, %v648_v42  ;;  %811 = vst.msk [vmem:[%s1500_s28 + $0x78] sm:$0xf] %vm780_vm5, %v1024_v40  ;;  %v1009_v47 = vpack.c.bf16 %v635_v46, %v635_v46  ;;  %v601_v49 = vmul.f32 0.1, %v481_v39  ;;  %vm585_vm4 = vcmp.ge.f32.partialorder %v545_v43, 0.0 }
 0x13f   : > { %793 = vst.msk [vmem:[%s1500_s28 + $0x30] sm:$0xf] %vm780_vm5, %v1006_v44  ;;  %v617_v22 = vmul.f32 0.1, %v545_v43  ;;  %v651_v50 = vsel %vm587_vm2, %v553_v38, %v619_v48 }
 0x140   : > { %809 = vst.msk [vmem:[%s1500_s28 + $0x70] sm:$0xf] %vm780_vm5, %v1022_v45  ;;  %796 = vst.msk [vmem:[%s1500_s28 + $0x3c] sm:$0xf] %vm780_vm5, %v1009_v47  ;;  %v633_v51 = vsel %vm569_vm3, %v481_v39, %v601_v49  ;;  %v1025_v52 = vpack.c.bf16 %v651_v50, %v651_v50 }
 0x141   : > { %v1007_v53 = vpack.c.bf16 %v633_v51, %v633_v51  ;;  %v649_v54 = vsel %vm585_vm4, %v545_v43, %v617_v22 }
 0x142   : > { %v1023_v55 = vpack.c.bf16 %v649_v54, %v649_v54  ;;  %812 = vst.msk [vmem:[%s1500_s28 + $0x7c] sm:$0xf] %vm780_vm5, %v1025_v52 }
 0x143   : > { %794 = vst.msk [vmem:[%s1500_s28 + $0x34] sm:$0xf] %vm780_vm5, %v1007_v53 }
 0x144   : > { %810 = vst.msk [vmem:[%s1500_s28 + $0x74] sm:$0xf] %vm780_vm5, %v1023_v55 }
 0x145   : > { %1232 = shalt.err (!%p1229_p0)
}
 0x146   : > { %s1233_s11 = scalar_lea.hbm %s1593_s25, 2048  ;;  %s1237_s30 = scalar_lea.hbm %s1647_s3, 4096 }
 0x147   : > { %p1234_p5 = scmp.ne.s32.totalorder %s1593_s25, %s1233_s11  ;;  %p1238_p4 = scmp.lt.s32.totalorder %s1593_s25, %s1647_s3 }
 0x148   : > { %p1239_p6 = scmp.lt.s32.totalorder %s1237_s30, %s1233_s11 }
 0x149   : > { %p1235_p2 = pnand %p1234_p5, %p1663_p11 }
 0x14a   : > { %p1240_p8 = por %p1239_p6, %p1238_p4 }
 0x14b   : > { %p1236_p1 = pneg %p1235_p2 }
 0x14d   : > { %p1241_p3 = pnand %p1240_p8, %p1236_p1 }
 0x14f   : > { %1244 = shalt.err (!%p1241_p3)
}
 0x150   : > { %s1295_s20 = smov 64   ;;  %s1296_s28 = smov 4  }
 0x151   : > { %1091 = dma.vmem_to_hbm [thread:$0]  (%p1663_p11), %s1595_s17, 2048, %s1593_s25, %s814_s4, %s1295_s20, %s1295_s20, %s1296_s28  }
 0x152 PF: > { %s842_s29 = sand.u32 1, %s1275_s12   ;;  %p1664_p7 = scmp.ne.s32.totalorder %s1653_s19, 0 }
 0x153   : > { %p1665_p9 = scmp.ge.s32.totalorder %s1287_s15, 2  ;;  %s843_s16 = scalar_lea.sflag [#allocation4], %s842_s29 }
 0x155   : > { %p1102_p10 = pnand %p1665_p9, %p1664_p7 }
 0x157   : > { %p1103_p12 = pneg %p1102_p10 }
 0x159   : > { %1270 = dma.done.wait (%p1103_p12), %s843_s16, 2048  }
 0x15a   : > { %1272 = vsyncadd (%p1103_p12), %s843_s16, 4294965248  ;;  %p17_p13 = scmp.ge.s32.totalorder %s1371_s24, 4   ;;  %s1666_s12 = smov %s1279_s13 }
 0x15b   : > { %s1667_s13 = smov %s1283_s14  ;;  %s1668_s14 = smov %s1391_s5 }
 0x15c   : > { %s1669_s15 = smov %s1371_s24  ;;  %19 = sbr.rel (!%p17_p13) target bundleno = 6 (0x6), region = 81 }
 0x161   :  { %848 = vsyncpa [#allocation3], 1 }
 0x162   :  { %850 = vsyncpa [#allocation3 + $0x1], 1 }
 0x163   :  { %851 = vsyncpa [#allocation6], 1 }
 0x164   :  { %852 = vsyncpa [#allocation4], 1 }
 0x165   :  { %854 = vsyncpa [#allocation4 + $0x1], 1 }

</bundles_post_ra>
